<compile_context>
chip_gen: v7x
topology: tpu7x:2x2x1
jax: 0.10.0
libtpu: 0.0.40
codegen_flags: <defaults>
</compile_context>

<pallas_src>
import jax
import jax.numpy as jnp
from jax.experimental import pallas as pl
from jax.experimental.pallas import tpu as pltpu


def repro_kernel(p1_ref, p2_ref, p3_ref, s3_ref, t1_ref, out_ref):
    a = p1_ref[0]
    b = p1_ref[1]
    p2 = p2_ref[0]
    p3 = p3_ref[0]
    s3 = s3_ref[0]
    t1 = t1_ref[0]

    # Hoisted exact reciprocals (only 3 scalar divides total).
    inv_a = 1.0 / a
    inv_b = 1.0 / b
    inv_s3 = 1.0 / s3

    div = a * inv_b                          # div   = a / b
    add_1 = p2 + div                         # add_1
    add_2 = a * 3.0 + p2 * b                 # add_2 = mul_1 + mul_2
    sub = b - p3                             # sub
    div_1 = (sub * sub) * inv_a              # pow_3 / a
    div_4 = (p2 - div_1) * inv_s3 * inv_s3   # ((p2 - div_1)/s3)/s3

    add_5 = t1 * (1.0 + div_4)               # folds neg/mul_4/neg_1 chain
    div_5 = t1 * inv_s3                      # t1 / s3
    div_7 = div_1 * inv_a                    # div_1 / a
    mul_5 = div_5 * div_7                    # (-neg_2) * div_7 == div_5 * div_7
    mul_7 = -(div_5 * inv_a) * (sub * 2.0)   # div_8 * mul_6, div_8 = -div_5/a

    mul_8 = t1 * add_1
    mul_9 = t1 * add_2
    add_6 = mul_7 + mul_8 * p2               # mul_7 + mul_10
    add_7 = mul_5 + mul_8 * 3.0              # mul_5 + mul_11

    div_10 = div * inv_b                     # div / b
    mul_12 = -(mul_9 * div_10)               # neg_4 * div_10
    div_11 = mul_9 * inv_b                   # mul_9 / b
    add_8 = add_7 + div_11
    add_9 = add_6 + mul_12

    mul_13 = add_5 * p2
    add_10 = add_9 + mul_13 * (b * 2.0)      # -> index 1 of the scattered output
    add_11 = add_8 + mul_13 * (a * 2.0)      # -> index 0 of the scattered output

    # add_12 = select_scatter(zeros, add_10, 0, 1) + select_scatter(zeros, add_11, 0, 0)
    out_ref[0] = add_11
    out_ref[1] = add_10


def repro_forward(primals_1, primals_2, primals_3, sub_3, tangents_1):
    """Returns add_12 (the grad w.r.t. primals_1); remaining FX outputs are None."""
    p1 = jnp.asarray(primals_1, jnp.float32).reshape((2,))
    p2 = jnp.asarray(primals_2, jnp.float32).reshape((1,))
    p3 = jnp.asarray(primals_3, jnp.float32).reshape((1,))
    s3 = jnp.asarray(sub_3, jnp.float32).reshape((1,))
    t1 = jnp.asarray(tangents_1, jnp.float32).reshape((1,))

    smem = pl.BlockSpec(memory_space=pltpu.SMEM)
    return pl.pallas_call(
        repro_kernel,
        out_shape=jax.ShapeDtypeStruct((2,), jnp.float32),
        in_specs=[smem, smem, smem, smem, smem],
        out_specs=smem,
    )(p1, p2, p3, s3, t1)


def repro_inline(primals_1, primals_2, primals_3, sub_3, tangents_1):
    """Fusable pure-JAX equivalent (preferred in a real pipeline: no custom-call
    boundary, XLA fuses these ~40 scalar ops with neighbors)."""
    return repro_reference(primals_1, primals_2, primals_3, sub_3, tangents_1)


def repro_reference(primals_1, primals_2, primals_3, sub_3, tangents_1):
    """Pure-JAX transcription of the FX graph for correctness checking."""
    a, b = primals_1[0], primals_1[1]
    p2, p3, s3, t1 = primals_2, primals_3, sub_3, tangents_1
    div = a / b
    add_1 = p2 + div
    add_2 = a * 3.0 + p2 * b
    sub = b - p3
    div_1 = sub ** 2 / a
    div_4 = ((p2 - div_1) / s3) / s3
    mul_4 = (-t1) * div_4
    div_5 = t1 / s3
    add_5 = (-mul_4) + t1
    neg_2 = -div_5
    div_7 = div_1 / a
    mul_5 = (-neg_2) * div_7
    div_8 = neg_2 / a
    mul_7 = div_8 * (sub * 2.0)
    mul_8 = t1 * add_1
    mul_9 = t1 * add_2
    add_6 = mul_7 + mul_8 * p2
    add_7 = mul_5 + mul_8 * 3.0
    div_10 = div / b
    mul_12 = (-mul_9) * div_10
    add_8 = add_7 + mul_9 / b
    add_9 = add_6 + mul_12
    mul_13 = add_5 * p2
    add_10 = add_9 + mul_13 * (b * 2.0)
    add_11 = add_8 + mul_13 * (a * 2.0)
    return jnp.stack([add_11, add_10])


if __name__ == "__main__":
    key = jax.random.PRNGKey(0)
    k1, k2, k3, k4, k5 = jax.random.split(key, 5)
    # Keep values away from zero to avoid divisions blowing up.
    primals_1 = jax.random.uniform(k1, (2,), jnp.float32, 0.5, 2.0)
    primals_2 = jax.random.uniform(k2, (), jnp.float32, 0.5, 2.0)
    primals_3 = jax.random.uniform(k3, (), jnp.float32, 0.5, 2.0)
    sub_3 = jax.random.uniform(k4, (), jnp.float32, 0.5, 2.0)
    tangents_1 = jax.random.uniform(k5, (), jnp.float32, -1.0, 1.0)

    out = repro_forward(primals_1, primals_2, primals_3, sub_3, tangents_1)
    out = jax.block_until_ready(out)

    ref = repro_reference(primals_1, primals_2, primals_3, sub_3, tangents_1)
    if not jnp.allclose(out, ref, rtol=1e-5, atol=1e-5):
        raise AssertionError(f"mismatch: pallas={out} ref={ref}")
    print("KERNEL_OK")
</pallas_src>

<mosaic_0001>
module attributes {stable_mosaic.version = 11 : i64} {
  func.func @repro_kernel(%arg0: memref<2xf32, #tpu.memory_space<smem>>, %arg1: memref<1xf32, #tpu.memory_space<smem>>, %arg2: memref<1xf32, #tpu.memory_space<smem>>, %arg3: memref<1xf32, #tpu.memory_space<smem>>, %arg4: memref<1xf32, #tpu.memory_space<smem>>, %arg5: memref<2xf32, #tpu.memory_space<smem>>) attributes {dimension_semantics = [], scalar_prefetch = 0 : i64, scratch_operands = 0 : i64, tpu.core_type = #tpu.core_type<tc>} {
    %c0 = arith.constant 0 : index
    %0 = memref.load %arg0[%c0] : memref<2xf32, #tpu.memory_space<smem>>
    %c1 = arith.constant 1 : index
    %1 = memref.load %arg0[%c1] : memref<2xf32, #tpu.memory_space<smem>>
    %c0_0 = arith.constant 0 : index
    %2 = memref.load %arg1[%c0_0] : memref<1xf32, #tpu.memory_space<smem>>
    %c0_1 = arith.constant 0 : index
    %3 = memref.load %arg2[%c0_1] : memref<1xf32, #tpu.memory_space<smem>>
    %c0_2 = arith.constant 0 : index
    %4 = memref.load %arg3[%c0_2] : memref<1xf32, #tpu.memory_space<smem>>
    %c0_3 = arith.constant 0 : index
    %5 = memref.load %arg4[%c0_3] : memref<1xf32, #tpu.memory_space<smem>>
    %cst = arith.constant 1.000000e+00 : f32
    %6 = arith.divf %cst, %0 : f32
    %cst_4 = arith.constant 1.000000e+00 : f32
    %7 = arith.divf %cst_4, %1 : f32
    %cst_5 = arith.constant 1.000000e+00 : f32
    %8 = arith.divf %cst_5, %4 : f32
    %9 = arith.mulf %0, %7 : f32
    %10 = arith.addf %2, %9 : f32
    %cst_6 = arith.constant 3.000000e+00 : f32
    %11 = arith.mulf %0, %cst_6 : f32
    %12 = arith.mulf %2, %1 : f32
    %13 = arith.addf %11, %12 : f32
    %14 = arith.subf %1, %3 : f32
    %15 = arith.mulf %14, %14 : f32
    %16 = arith.mulf %15, %6 : f32
    %17 = arith.subf %2, %16 : f32
    %18 = arith.mulf %17, %8 : f32
    %19 = arith.mulf %18, %8 : f32
    %cst_7 = arith.constant 1.000000e+00 : f32
    %20 = arith.addf %cst_7, %19 : f32
    %21 = arith.mulf %5, %20 : f32
    %22 = arith.mulf %5, %8 : f32
    %23 = arith.mulf %16, %6 : f32
    %24 = arith.mulf %22, %23 : f32
    %25 = arith.mulf %22, %6 : f32
    %cst_8 = arith.constant 0.000000e+00 : f32
    %26 = arith.subf %cst_8, %25 : f32
    %cst_9 = arith.constant 2.000000e+00 : f32
    %27 = arith.mulf %14, %cst_9 : f32
    %28 = arith.mulf %26, %27 : f32
    %29 = arith.mulf %5, %10 : f32
    %30 = arith.mulf %5, %13 : f32
    %31 = arith.mulf %29, %2 : f32
    %32 = arith.addf %28, %31 : f32
    %cst_10 = arith.constant 3.000000e+00 : f32
    %33 = arith.mulf %29, %cst_10 : f32
    %34 = arith.addf %24, %33 : f32
    %35 = arith.mulf %9, %7 : f32
    %36 = arith.mulf %30, %35 : f32
    %cst_11 = arith.constant 0.000000e+00 : f32
    %37 = arith.subf %cst_11, %36 : f32
    %38 = arith.mulf %30, %7 : f32
    %39 = arith.addf %34, %38 : f32
    %40 = arith.addf %32, %37 : f32
    %41 = arith.mulf %21, %2 : f32
    %cst_12 = arith.constant 2.000000e+00 : f32
    %42 = arith.mulf %1, %cst_12 : f32
    %43 = arith.mulf %41, %42 : f32
    %44 = arith.addf %40, %43 : f32
    %cst_13 = arith.constant 2.000000e+00 : f32
    %45 = arith.mulf %0, %cst_13 : f32
    %46 = arith.mulf %41, %45 : f32
    %47 = arith.addf %39, %46 : f32
    %c0_14 = arith.constant 0 : index
    %48 = memref.load %arg5[%c0_14] : memref<2xf32, #tpu.memory_space<smem>>
    memref.store %47, %arg5[%c0_14] : memref<2xf32, #tpu.memory_space<smem>>
    %c1_15 = arith.constant 1 : index
    %49 = memref.load %arg5[%c1_15] : memref<2xf32, #tpu.memory_space<smem>>
    memref.store %44, %arg5[%c1_15] : memref<2xf32, #tpu.memory_space<smem>>
    return
  }
}

</mosaic_0001>

<bundles_post_ra>
// kernel: tpu_custom_call.1
= control target key start
LH: loop header
LB: loop body
LE: loop exit
PB: predicated region body
PF: predicated region fallthrough
CT: control target
= control target key end

     0   :  { %s250_s0 = inlined_call_operand.vmem [shape: f32[2], index: 0, kind: input, shape index: {}]   ;;  %s251_s1 = inlined_call_operand.<no memory space> [shape: f32[1], index: 1, kind: input, shape index: {}]   ;;  %s252_s2 = inlined_call_operand.<no memory space> [shape: f32[1], index: 2, kind: input, shape index: {}]   ;;  %s253_s3 = inlined_call_operand.<no memory space> [shape: f32[1], index: 3, kind: input, shape index: {}]   ;;  %s254_s4 = inlined_call_operand.<no memory space> [shape: f32[1], index: 4, kind: input, shape index: {}]   ;;  %s255_s5 = inlined_call_operand.hbm [shape: f32[2], index: 5, kind: output, shape index: {}]  }
   0x1   :  { %258 = sst [smem:[#allocation12_spill]] %s251_s1 }
   0x2   :  { %259 = sst [smem:[#allocation13_spill]] %s255_s5 }
   0x3   :  { %14 = vsyncpa [#allocation8], 0 }
   0x4   :  { %15 = vsyncpa [#allocation7], 0  ;;  %s22_s20 = sshll.u32 %s250_s0, 4  ;;  %s23_s20 = int_to_ptr.vmem [resolvable:$true] %s22_s20 }
   0x5   :  { %s125_s21 = scalar_lea.vmem %s23_s20, 16  ;;  %p130_p1 = scmp.lt.s32.totalorder %s23_s20, %s23_s20 }
   0x6   :  { %p126_p0 = scmp.ne.s32.totalorder %s23_s20, %s125_s21  ;;  %p131_p2 = scmp.lt.s32.totalorder %s125_s21, %s125_s21 }
   0x8   :  { %p132_p3 = por %p131_p2, %p130_p1 }
   0xa   :  { %p133_p4 = pnand %p132_p3, %p126_p0 }
   0xc   :  { %136 = shalt.err (!%p133_p4)
}
   0xd   :  { %s151_s22 = smov [#allocation6]  }
   0xe   :  { %25 = dma.vmem_to_smem %s23_s20, 16, %s151_s22, [#allocation8]  }
   0xf   :  { %147 = dma.done.wait [#allocation8], 16  }
  0x10   :  { %148 = vsyncadd [#allocation8], 4294967280 }
  0x11   :  { %37 = sfence }
  0x12   :  { %s186_s23 = sld [smem:[#allocation6]]  ;;  %s188_s24 = sld [smem:[#allocation6 + $0x1]]  ;;  %v50_v0 = vstv %s253_s3 }
  0x13   :  { %119 = vrcp.f32 %v50_v0  ;;  %s260_s12 = sld [smem:[#allocation12_spill]] }
  0x18   :  { %v44_v1 = vstv %s186_s23  ;;  %v47_v2 = vstv %s188_s24  ;;  %s55_s26 = smul.f32 3.0, %s186_s23  ;;  %s204_s7 = ssub.f32 %s188_s24, %s252_s2 }
  0x19   :  { %121 = vrcp.f32 %v44_v1  ;;  %s56_s29 = smul.f32 %s188_s24, %s251_s1 }
  0x1a   :  { %123 = vrcp.f32 %v47_v2  ;;  %s59_s8 = smul.f32 %s204_s7, %s204_s7 }
  0x1b   :  { %s57_s30 = sadd.f32 %s56_s29, %s55_s26  ;;  %s71_s9 = smul.f32 2.0, %s204_s7 }
  0x1c   :  { %s89_s18 = smul.f32 2.0, %s186_s23 }
  0x1d   :  { %v120_v3 = vpop.eup %119  ;;  %s74_s14 = smul.f32 %s57_s30, %s254_s4 }
  0x23   :  { %v122_v4 = vpop.eup %121 }
  0x24   :  { %v124_v5 = vpop.eup %123  ;;  %111 = vpush %v122_v4 }
  0x25   :  { %113 = vpush %v124_v5 }
  0x26   :  { %115 = vpush %v120_v3 }
  0x55   :  { %s112_s11 = spop %111 }
  0x56   :  { %s60_s15 = smul.f32 %s112_s11, %s59_s8  ;;  %s114_s16 = spop %113 }
  0x57   :  { %s53_s17 = smul.f32 %s114_s16, %s186_s23  ;;  %s116_s30 = spop %115 }
  0x58   :  { %s67_s22 = smul.f32 %s112_s11, %s60_s15  ;;  %s61_s26 = ssub.f32 %s251_s1, %s60_s15 }
  0x59   :  { %s54_s2 = sadd.f32 %s53_s17, %s251_s1  ;;  %s79_s21 = smul.f32 %s114_s16, %s53_s17 }
  0x5a   :  { %s62_s8 = smul.f32 %s116_s30, %s61_s26 }
  0x5b   :  { %s73_s29 = smul.f32 %s54_s2, %s254_s4 }
  0x5c   :  { %s80_s3 = smul.f32 %s79_s21, %s74_s14 }
  0x5d   :  { %s75_s23 = smul.f32 %s73_s29, %s251_s1 }
  0x5e   :  { %s66_s17 = smul.f32 %s116_s30, %s254_s4  ;;  %s81_s6 = ssub.f32 0.0, %s80_s3 }
  0x5f   :  { %s63_s19 = smul.f32 %s116_s30, %s62_s8 }
  0x60   :  { %s68_s20 = smul.f32 %s67_s22, %s66_s17 }
  0x61   :  { %s64_s0 = sadd.f32 1.0, %s63_s19  ;;  %s69_s15 = smul.f32 %s112_s11, %s66_s17 }
  0x62   :  { %s77_s25 = smul.f32 3.0, %s73_s29 }
  0x63   :  { %s65_s2 = smul.f32 %s64_s0, %s254_s4  ;;  %s70_s21 = ssub.f32 0.0, %s69_s15 }
  0x64   :  { %s82_s28 = smul.f32 %s114_s16, %s74_s14  ;;  %s78_s5 = sadd.f32 %s77_s25, %s68_s20 }
  0x65   :  { %s72_s7 = smul.f32 %s71_s9, %s70_s21  ;;  %s262_s14 = sld [smem:[#allocation13_spill]] }
  0x66   :  { %s85_s13 = smul.f32 %s65_s2, %s260_s12  ;;  %s83_s8 = sadd.f32 %s82_s28, %s78_s5 }
  0x67   :  { %s76_s30 = sadd.f32 %s75_s23, %s72_s7  ;;  %s261_s22 = smul.f32 2.0, %s188_s24 }
  0x68   :  { %s90_s17 = smul.f32 %s89_s18, %s85_s13 }
  0x69   :  { %s87_s19 = smul.f32 %s261_s22, %s85_s13  ;;  %s84_s11 = sadd.f32 %s81_s6, %s76_s30 }
  0x6a   :  { %s91_s10 = sadd.f32 %s90_s17, %s83_s8 }
  0x6b   :  { %s88_s29 = sadd.f32 %s87_s19, %s84_s11  ;;  %s137_s16 = scalar_lea.hbm %s262_s14, 16 }
  0x6c   :  { %93 = sst [smem:[#allocation9]] %s91_s10  ;;  %p138_p5 = scmp.ne.s32.totalorder %s262_s14, %s137_s16 }
  0x6d   :  { %95 = sst [smem:[#allocation9 + $0x1]] %s88_s29  ;;  %p141_p6 = scmp.lt.u32.totalorder %s137_s16, %s262_s14 }
  0x6f   :  { %p143_p7 = pnand %p141_p6, %p138_p5 }
  0x71   :  { %146 = shalt.err (!%p143_p7)
}
  0x72   :  { %s152_s5 = smov [#allocation9]  }
  0x73   :  { %103 = dma.smem_to_hbm %s152_s5, 16, %s262_s14, [#allocation7]  }
  0x74   :  { %149 = dma.done.wait [#allocation7], 16  }
  0x75   :  { %150 = vsyncadd [#allocation7], 4294967280 }
  0x76   :  { %107 = sfence }
  0x77   :  { %108 = vsyncpa [#allocation7], 1 }
  0x78   :  { %109 = vsyncpa [#allocation8], 1 }

</bundles_post_ra>
